<compile_context>
chip_gen: v7x
topology: tpu7x:2x2x1
jax: 0.10.0
libtpu: 0.0.40
codegen_flags: <defaults>
</compile_context>

<pallas_src>
import jax
import jax.numpy as jnp
from jax.experimental import pallas as pl
from jax.experimental.pallas import tpu as pltpu

INPUT_SIZE = 4
HIDDEN_SIZE = 20
OUTPUT_SIZE = 3

DEFAULT_GROUP = 32        # 4*G = 128 -> one full lane-tile per packed row.
DEFAULT_TILE_ROWS = 2048  # packed rows per grid step (= 65536 original rows).


def _round_up(a, m):
    return ((a + m - 1) // m) * m


def _mlp_kernel(x_ref, w1_ref, b1_ref, w2_ref, b2_ref, o_ref):
    # x_ref : (tbr, 4G)  f32, lane-dense (4G == 128 for the default group)
    # w1_ref: (4G, 20G)  bf16 block-diagonal (W1^T blocks)
    # b1_ref: (1, 20G)   f32
    # w2_ref: (20G, 3G)  bf16 block-diagonal (W2^T blocks)
    # b2_ref: (1, 3G)    f32
    # o_ref : (tbr, 3G)  f32
    # Cast activations to bf16 in-kernel (VPU, hidden under DMA) so both MXU
    # matmuls are guaranteed single-pass; accumulate in f32.
    x = x_ref[...].astype(jnp.bfloat16)
    h = jnp.dot(x, w1_ref[...], preferred_element_type=jnp.float32)
    h = jnp.maximum(h + b1_ref[...], 0.0)                       # bias + ReLU on VPU
    y = jnp.dot(h.astype(jnp.bfloat16), w2_ref[...],
                preferred_element_type=jnp.float32)
    o_ref[...] = (y + b2_ref[...]).astype(o_ref.dtype)


def ann_one_hid_forward(x, w1, b1, w2, b2, *,
                        group=DEFAULT_GROUP, tile_rows=DEFAULT_TILE_ROWS):
    """Forward pass of AnnOneHid.

    x : (B, 4)   float32   (row-major, same as PyTorch)
    w1: (20, 4)  float32   (PyTorch nn.Linear layout: (out_features, in_features))
    b1: (20,)    float32
    w2: (3, 20)  float32
    b2: (3,)     float32
    returns (B, 3) float32
    """
    B, in_dim = x.shape
    assert in_dim == INPUT_SIZE
    assert group >= 1
    assert tile_rows >= 8 and tile_rows % 8 == 0

    # --- Group-pack the batch (free row-major reshape; pad <group rows only). ---
    bp = _round_up(B, group)
    if bp != B:
        x = jnp.pad(x, ((0, bp - B), (0, 0)))
    pr = bp // group                                   # packed rows
    x_packed = x.reshape(pr, INPUT_SIZE * group)       # (pr, 4G) -- free reshape

    # --- Block-diagonal weights / tiled biases (built once, tiny). ---
    eye = jnp.eye(group, dtype=jnp.float32)
    w1_blk = jnp.kron(eye, w1.T).astype(jnp.bfloat16)  # (4G, 20G)
    w2_blk = jnp.kron(eye, w2.T).astype(jnp.bfloat16)  # (20G, 3G)
    b1_blk = jnp.tile(b1, group).reshape(1, HIDDEN_SIZE * group)
    b2_blk = jnp.tile(b2, group).reshape(1, OUTPUT_SIZE * group)

    # --- Batch tile: big enough to amortize per-step overhead, and >= 2 tiles
    #     when possible so v7x can shard the grid across its two TensorCores. ---
    tbr = min(tile_rows, _round_up(pl.cdiv(pr, 2), 8))
    if tbr >= pr:
        tbr = pr            # single full-extent block (legal for any pr)
    n_tiles = pl.cdiv(pr, tbr)

    out_packed = pl.pallas_call(
        _mlp_kernel,
        out_shape=jax.ShapeDtypeStruct((pr, OUTPUT_SIZE * group), x.dtype),
        grid_spec=pltpu.PrefetchScalarGridSpec(
            num_scalar_prefetch=0,
            grid=(n_tiles,),
            in_specs=[
                # Streamed, lane-dense activation tile (natural layout).
                pl.BlockSpec((tbr, INPUT_SIZE * group), lambda i: (i, 0)),
                # Weights / biases: constant index_map -> resident in VMEM.
                pl.BlockSpec((INPUT_SIZE * group, HIDDEN_SIZE * group),
                             lambda i: (0, 0)),
                pl.BlockSpec((1, HIDDEN_SIZE * group), lambda i: (0, 0)),
                pl.BlockSpec((HIDDEN_SIZE * group, OUTPUT_SIZE * group),
                             lambda i: (0, 0)),
                pl.BlockSpec((1, OUTPUT_SIZE * group), lambda i: (0, 0)),
            ],
            out_specs=pl.BlockSpec((tbr, OUTPUT_SIZE * group), lambda i: (i, 0)),
        ),
        compiler_params=pltpu.CompilerParams(
            dimension_semantics=("parallel",),
            vmem_limit_bytes=32 * 1024 * 1024,
        ),
    )(x_packed, w1_blk, b1_blk, w2_blk, b2_blk)

    # Free reshape back to (bp, 3); crop padded rows.
    return out_packed.reshape(bp, OUTPUT_SIZE)[:B]


def init_params(key):
    """Deterministic init mimicking nn.Linear's U(-1/sqrt(fan_in), 1/sqrt(fan_in)).

    Weights kept in the native PyTorch (out_features, in_features) layout.
    """
    k1, k2, k3, k4 = jax.random.split(key, 4)
    bound1 = 1.0 / jnp.sqrt(float(INPUT_SIZE))
    bound2 = 1.0 / jnp.sqrt(float(HIDDEN_SIZE))
    w1 = jax.random.uniform(k1, (HIDDEN_SIZE, INPUT_SIZE),
                            minval=-bound1, maxval=bound1, dtype=jnp.float32)
    b1 = jax.random.uniform(k2, (HIDDEN_SIZE,),
                            minval=-bound1, maxval=bound1, dtype=jnp.float32)
    w2 = jax.random.uniform(k3, (OUTPUT_SIZE, HIDDEN_SIZE),
                            minval=-bound2, maxval=bound2, dtype=jnp.float32)
    b2 = jax.random.uniform(k4, (OUTPUT_SIZE,),
                            minval=-bound2, maxval=bound2, dtype=jnp.float32)
    return w1, b1, w2, b2


def _reference_f32(x, w1, b1, w2, b2):
    return jnp.maximum(x @ w1.T + b1, 0.0) @ w2.T + b2


def _reference_bf16(x, w1, b1, w2, b2):
    # Mirrors the kernel's bf16-input / f32-accumulate MXU numerics.
    h = jnp.dot(x.astype(jnp.bfloat16), w1.T.astype(jnp.bfloat16),
                preferred_element_type=jnp.float32) + b1
    h = jnp.maximum(h, 0.0)
    return jnp.dot(h.astype(jnp.bfloat16), w2.T.astype(jnp.bfloat16),
                   preferred_element_type=jnp.float32) + b2


if __name__ == "__main__":
    key = jax.random.PRNGKey(0)
    k_x1, k_x2, k_p = jax.random.split(key, 3)
    w1, b1, w2, b2 = init_params(k_p)

    # Tiny batch: pads to one group of 32, single grid step.
    B1 = 8
    x1 = jax.random.normal(k_x1, (B1, INPUT_SIZE), dtype=jnp.float32)
    out1 = jax.block_until_ready(ann_one_hid_forward(x1, w1, b1, w2, b2))
    assert out1.shape == (B1, OUTPUT_SIZE)
    # Loose check vs the f32 reference (bf16 single-pass MXU numerics) ...
    assert jnp.allclose(out1, _reference_f32(x1, w1, b1, w2, b2),
                        atol=5e-2, rtol=5e-2)
    # ... and a tight check vs a bf16-mirrored reference.
    assert jnp.allclose(out1, _reference_bf16(x1, w1, b1, w2, b2),
                        atol=2e-3, rtol=2e-3)

    # Non-multiple batch exercising the multi-tile grid and an overhanging
    # last block: 900 rows -> 29 packed rows -> 2 tiles of 16 (2nd overhangs).
    B2 = 900
    x2 = jax.random.normal(k_x2, (B2, INPUT_SIZE), dtype=jnp.float32)
    out2 = jax.block_until_ready(ann_one_hid_forward(x2, w1, b1, w2, b2))
    assert out2.shape == (B2, OUTPUT_SIZE)
    assert jnp.allclose(out2, _reference_f32(x2, w1, b1, w2, b2),
                        atol=5e-2, rtol=5e-2)
    assert jnp.allclose(out2, _reference_bf16(x2, w1, b1, w2, b2),
                        atol=2e-3, rtol=2e-3)

    print("KERNEL_OK")
</pallas_src>

<mosaic_0001>
module attributes {stable_mosaic.version = 11 : i64} {
  func.func @_mlp_kernel(%arg0: i32, %arg1: memref<1x128xf32, #tpu.memory_space<vmem>>, %arg2: memref<128x640xbf16, #tpu.memory_space<vmem>>, %arg3: memref<1x640xf32, #tpu.memory_space<vmem>>, %arg4: memref<640x96xbf16, #tpu.memory_space<vmem>>, %arg5: memref<1x96xf32, #tpu.memory_space<vmem>>, %arg6: memref<1x96xf32, #tpu.memory_space<vmem>>) attributes {dimension_semantics = [#tpu.dimension_semantics<parallel>], iteration_bounds = array<i64: 1>, scalar_prefetch = 0 : i64, scratch_operands = 0 : i64, tpu.core_type = #tpu.core_type<tc>, window_params = [{transform_indices = @transform_0, window_bounds = array<i64: 1, 128>}, {pipeline_mode = #tpu.pipeline_mode<synchronous>, transform_indices = @transform_1, window_bounds = array<i64: 128, 640>}, {pipeline_mode = #tpu.pipeline_mode<synchronous>, transform_indices = @transform_2, window_bounds = array<i64: 1, 640>}, {pipeline_mode = #tpu.pipeline_mode<synchronous>, transform_indices = @transform_3, window_bounds = array<i64: 640, 96>}, {pipeline_mode = #tpu.pipeline_mode<synchronous>, transform_indices = @transform_4, window_bounds = array<i64: 1, 96>}, {transform_indices = @transform_5, window_bounds = array<i64: 1, 96>}]} {
    %c0 = arith.constant 0 : index
    %c0_0 = arith.constant 0 : index
    %0 = vector.load %arg1[%c0, %c0_0] : memref<1x128xf32, #tpu.memory_space<vmem>>, vector<1x128xf32>
    %1 = arith.truncf %0 : vector<1x128xf32> to vector<1x128xbf16>
    %c0_1 = arith.constant 0 : index
    %c0_2 = arith.constant 0 : index
    %2 = vector.load %arg2[%c0_1, %c0_2] : memref<128x640xbf16, #tpu.memory_space<vmem>>, vector<128x640xbf16>
    %cst = arith.constant dense<0.000000e+00> : vector<1x640xf32>
    %3 = tpu.matmul %1, %2, %cst {dimension_numbers = #tpu.dot_dimension_numbers<[1], [0], [0], [1], [0, 0, 1, 1], [], []>} : vector<1x128xbf16>, vector<128x640xbf16>, vector<1x640xf32> -> vector<1x640xf32>
    %c0_3 = arith.constant 0 : index
    %c0_4 = arith.constant 0 : index
    %4 = vector.load %arg3[%c0_3, %c0_4] : memref<1x640xf32, #tpu.memory_space<vmem>>, vector<1x640xf32>
    %5 = arith.addf %3, %4 : vector<1x640xf32>
    %cst_5 = arith.constant 0.000000e+00 : f32
    %6 = vector.broadcast %cst_5 : f32 to vector<1x640xf32>
    %7 = arith.maximumf %5, %6 : vector<1x640xf32>
    %8 = arith.truncf %7 : vector<1x640xf32> to vector<1x640xbf16>
    %c0_6 = arith.constant 0 : index
    %c0_7 = arith.constant 0 : index
    %9 = vector.load %arg4[%c0_6, %c0_7] : memref<640x96xbf16, #tpu.memory_space<vmem>>, vector<640x96xbf16>
    %cst_8 = arith.constant dense<0.000000e+00> : vector<1x96xf32>
    %10 = tpu.matmul %8, %9, %cst_8 {dimension_numbers = #tpu.dot_dimension_numbers<[1], [0], [0], [1], [0, 0, 1, 1], [], []>} : vector<1x640xbf16>, vector<640x96xbf16>, vector<1x96xf32> -> vector<1x96xf32>
    %c0_9 = arith.constant 0 : index
    %c0_10 = arith.constant 0 : index
    %11 = vector.load %arg5[%c0_9, %c0_10] : memref<1x96xf32, #tpu.memory_space<vmem>>, vector<1x96xf32>
    %12 = arith.addf %10, %11 : vector<1x96xf32>
    %c0_11 = arith.constant 0 : index
    %c0_12 = arith.constant 0 : index
    %13 = vector.load %arg6[%c0_11, %c0_12] : memref<1x96xf32, #tpu.memory_space<vmem>>, vector<1x96xf32>
    tpu.vector_store %arg6[%c0_11, %c0_12], %12 {strides = array<i32>} : memref<1x96xf32, #tpu.memory_space<vmem>>, vector<1x96xf32>,
    return
  }
  func.func @transform_0(%arg0: i32) -> (i32, i32) {
    %c0_i32 = arith.constant 0 : i32
    %c0_i32_0 = arith.constant 0 : i32
    return %arg0, %c0_i32 : i32, i32
  }
  func.func @transform_1(%arg0: i32) -> (i32, i32) {
    %c0_i32 = arith.constant 0 : i32
    %c0_i32_0 = arith.constant 0 : i32
    %c0_i32_1 = arith.constant 0 : i32
    return %c0_i32, %c0_i32_0 : i32, i32
  }
  func.func @transform_2(%arg0: i32) -> (i32, i32) {
    %c0_i32 = arith.constant 0 : i32
    %c0_i32_0 = arith.constant 0 : i32
    %c0_i32_1 = arith.constant 0 : i32
    return %c0_i32, %c0_i32_0 : i32, i32
  }
  func.func @transform_3(%arg0: i32) -> (i32, i32) {
    %c0_i32 = arith.constant 0 : i32
    %c0_i32_0 = arith.constant 0 : i32
    %c0_i32_1 = arith.constant 0 : i32
    return %c0_i32, %c0_i32_0 : i32, i32
  }
  func.func @transform_4(%arg0: i32) -> (i32, i32) {
    %c0_i32 = arith.constant 0 : i32
    %c0_i32_0 = arith.constant 0 : i32
    %c0_i32_1 = arith.constant 0 : i32
    return %c0_i32, %c0_i32_0 : i32, i32
  }
  func.func @transform_5(%arg0: i32) -> (i32, i32) {
    %c0_i32 = arith.constant 0 : i32
    %c0_i32_0 = arith.constant 0 : i32
    return %arg0, %c0_i32 : i32, i32
  }
}

</mosaic_0001>

<bundles_post_ra>
// kernel: tpu_custom_call.1
= control target key start
LH: loop header
LB: loop body
LE: loop exit
PB: predicated region body
PF: predicated region fallthrough
CT: control target
= control target key end

     0   :  { %v1202_v2 = vmov 0   ;;  %v1203_v37 = vmov 0.0   ;;  %vm1204_vm0 = vmmov 0   ;;  %s1517_s0 = inlined_call_operand.vmem [shape: f32[1,128], index: 0, kind: input, shape index: {}]   ;;  %s1518_s1 = inlined_call_operand.vmem [shape: bf16[128,640], index: 1, kind: input, shape index: {}]   ;;  %s1519_s2 = inlined_call_operand.vmem [shape: f32[1,640], index: 2, kind: input, shape index: {}]   ;;  %s1520_s3 = inlined_call_operand.vmem [shape: bf16[640,96], index: 3, kind: input, shape index: {}]   ;;  %s1521_s4 = inlined_call_operand.vmem [shape: f32[1,96], index: 4, kind: input, shape index: {}]   ;;  %s1522_s5 = inlined_call_operand.hbm [shape: f32[1,96], index: 5, kind: output, shape index: {}]  }
   0x1   :  { %v1082_v0 = vld [vmem:[%s1518_s1 + $0x4] ss:$20 sps:$4 sm:$0xff]   ;;  %v1084_v1 = vld [vmem:[%s1518_s1] ss:$20 sps:$4 sm:$0xff]   ;;  %339 = vmatprep.mubr.bf16.mxu0 %v1202_v2  ;;  %380 = vmatprep.mubr.bf16.mxu1 %v1202_v2  ;;  %v1087_v4 = vld [vmem:[%s1518_s1 + $0x8] ss:$20 sps:$4 sm:$0xff]  }
   0x2   :  { %307 = vmatprep.subr.bf16.mxu0 %v1082_v0  ;;  %v1085_v3 = vld [vmem:[%s1518_s1 + $0xc] ss:$20 sps:$4 sm:$0xff]   ;;  %v1090_v6 = vld [vmem:[%s1518_s1 + $0x28] ss:$20 sps:$4 sm:$0xff]   ;;  %v1093_v8 = vld [vmem:[%s1518_s1 + $0x30] ss:$20 sps:$4 sm:$0xff]  }
   0x3   :  { %308 = vmatpush1.bf16.msra.mxu0 %v1084_v1  ;;  %v1088_v5 = vld [vmem:[%s1518_s1 + $0x2c] ss:$20 sps:$4 sm:$0xff]   ;;  %348 = vmatprep.subr.bf16.mxu1 %v1085_v3  ;;  %v1091_v7 = vld [vmem:[%s1518_s1 + $0x34] ss:$20 sps:$4 sm:$0xff]   ;;  %v1096_v10 = vld [vmem:[%s1518_s1 + $0x50] ss:$20 sps:$4 sm:$0xff]  }
   0x4   :  { %349 = vmatpush1.bf16.msra.mxu1 %v1087_v4  ;;  %309 = vmatprep.subr.bf16.mxu0 %v1088_v5  ;;  %v1094_v9 = vld [vmem:[%s1518_s1 + $0x54] ss:$20 sps:$4 sm:$0xff]   ;;  %v1097_v11 = vld [vmem:[%s1518_s1 + $0x5c] ss:$20 sps:$4 sm:$0xff]   ;;  %v1099_v13 = vld [vmem:[%s1518_s1 + $0x58] ss:$20 sps:$4 sm:$0xff]  }
   0x5   :  { %350 = vmatprep.subr.bf16.mxu1 %v1091_v7  ;;  %v1100_v12 = vld [vmem:[%s1518_s1 + $0x7c] ss:$20 sps:$4 sm:$0xff]   ;;  %v1103_v14 = vld [vmem:[%s1518_s1 + $0x84] ss:$20 sps:$4 sm:$0xff]   ;;  %v1105_v17 = vld [vmem:[%s1518_s1 + $0x80] ss:$20 sps:$4 sm:$0xff]  }
   0x6   :  { %v1102_v15 = vld [vmem:[%s1518_s1 + $0x78] ss:$20 sps:$4 sm:$0xff]   ;;  %v1108_v19 = vld [vmem:[%s1518_s1 + $0xa0] ss:$20 sps:$4 sm:$0xff]   ;;  %v1111_v21 = vld [vmem:[%s1518_s1 + $0xa8] ss:$20 sps:$4 sm:$0xff]  }
   0x7   :  { %310 = vmatpush1.bf16.msra.mxu0 %v1090_v6  ;;  %v1106_v16 = vld [vmem:[%s1518_s1 + $0xa4] ss:$20 sps:$4 sm:$0xff]   ;;  %v1109_v18 = vld [vmem:[%s1518_s1 + $0xac] ss:$20 sps:$4 sm:$0xff]   ;;  %v1115_v22 = vld [vmem:[%s1518_s1 + $0xd4] ss:$20 sps:$4 sm:$0xff]  }
   0x8   :  { %311 = vmatprep.subr.bf16.mxu0 %v1094_v9  ;;  %351 = vmatpush1.bf16.msra.mxu1 %v1093_v8  ;;  %v1112_v20 = vld [vmem:[%s1518_s1 + $0xcc] ss:$20 sps:$4 sm:$0xff]   ;;  %v1114_v23 = vld [vmem:[%s1518_s1 + $0xc8] ss:$20 sps:$4 sm:$0xff]   ;;  %v1117_v25 = vld [vmem:[%s1518_s1 + $0xd0] ss:$20 sps:$4 sm:$0xff]  }
   0x9   :  { %352 = vmatprep.subr.bf16.mxu1 %v1097_v11  ;;  %v1118_v24 = vld [vmem:[%s1518_s1 + $0xf4] ss:$20 sps:$4 sm:$0xff]   ;;  %v1120_v26 = vld [vmem:[%s1518_s1 + $0xf0] ss:$20 sps:$4 sm:$0xff]   ;;  %v1123_v28 = vld [vmem:[%s1518_s1 + $0xf8] ss:$20 sps:$4 sm:$0xff]  }
   0xa   :  { %v1121_v27 = vld [vmem:[%s1518_s1 + $0xfc] ss:$20 sps:$4 sm:$0xff]   ;;  %v1126_v30 = vld [vmem:[%s1518_s1 + $0x118] ss:$20 sps:$4 sm:$0xff]   ;;  %v22_v32 = vld [vmem:[%s1517_s0] sm:$0x1] }
   0xb   :  { %312 = vmatpush1.bf16.msra.mxu0 %v1096_v10  ;;  %v1124_v29 = vld [vmem:[%s1518_s1 + $0x11c] ss:$20 sps:$4 sm:$0xff]   ;;  %v1127_v31 = vld [vmem:[%s1518_s1 + $0x124] ss:$20 sps:$4 sm:$0xff]   ;;  %v1129_v33 = vld [vmem:[%s1518_s1 + $0x120] ss:$20 sps:$4 sm:$0xff]   ;;  %v23_v34 = vpack.c.bf16 %v22_v32, %v22_v32 }
   0xc   :  { %313 = vmatprep.subr.bf16.mxu0 %v1100_v12  ;;  %353 = vmatpush1.bf16.msra.mxu1 %v1099_v13  ;;  %v1138_v35 = vld [vmem:[%s1520_s3 + $0x40] sm:$0xff]   ;;  %v1141_v39 = vld [vmem:[%s1520_s3 + $0x48] sm:$0xff]   ;;  %v1145_v42 = vld [vmem:[%s1520_s3 + $0x50] sm:$0xff]  }
   0xd   :  { %354 = vmatprep.subr.bf16.mxu1 %v1103_v14  ;;  %v1130_v36 = vld [vmem:[%s1518_s1 + $0x10] ss:$20 sps:$4 sm:$0xff]   ;;  %v1131_v40 = vld [vmem:[%s1518_s1 + $0x38] ss:$20 sps:$4 sm:$0xff]   ;;  %v1132_v43 = vld [vmem:[%s1518_s1 + $0x60] ss:$20 sps:$4 sm:$0xff]  }
   0xe   :  { %v1139_v38 = vld [vmem:[%s1520_s3] sm:$0xff]   ;;  %v1143_v41 = vld [vmem:[%s1520_s3 + $0x8] sm:$0xff]   ;;  %v1147_v44 = vld [vmem:[%s1520_s3 + $0x10] sm:$0xff]  }
   0xf   :  { %314 = vmatpush1.bf16.msra.mxu0 %v1102_v15  ;;  %v1149_v45 = vld [vmem:[%s1520_s3 + $0x58] sm:$0xff]   ;;  %v1153_v48 = vld [vmem:[%s1520_s3 + $0x60] sm:$0xff]   ;;  %v1157_v51 = vld [vmem:[%s1520_s3 + $0x68] sm:$0xff]  }
  0x10   :  { %315 = vmatprep.subr.bf16.mxu0 %v1106_v16  ;;  %355 = vmatpush1.bf16.msra.mxu1 %v1105_v17  ;;  %v1133_v46 = vld [vmem:[%s1518_s1 + $0x88] ss:$20 sps:$4 sm:$0xff]   ;;  %v1134_v49 = vld [vmem:[%s1518_s1 + $0xb0] ss:$20 sps:$4 sm:$0xff]   ;;  %v1135_v52 = vld [vmem:[%s1518_s1 + $0xd8] ss:$20 sps:$4 sm:$0xff]  }
  0x11   :  { %356 = vmatprep.subr.bf16.mxu1 %v1109_v18  ;;  %v1151_v47 = vld [vmem:[%s1520_s3 + $0x18] sm:$0xff]   ;;  %v1155_v50 = vld [vmem:[%s1520_s3 + $0x20] sm:$0xff]   ;;  %v1159_v53 = vld [vmem:[%s1520_s3 + $0x28] sm:$0xff]  }
  0x12   :  { %v1136_v54 = vld [vmem:[%s1518_s1 + $0x100] ss:$20 sps:$4 sm:$0xff]   ;;  %v1137_v55 = vld [vmem:[%s1518_s1 + $0x128] ss:$20 sps:$4 sm:$0xff]  }
  0x13   :  { %316 = vmatpush1.bf16.msra.mxu0 %v1108_v19  ;;  %v1140_v56 = vld [vmem:[%s1520_s3 + $0xc0] sm:$0xff]   ;;  %v1144_v58 = vld [vmem:[%s1520_s3 + $0xc8] sm:$0xff]  }
  0x14   :  { %317 = vmatprep.subr.bf16.mxu0 %v1112_v20  ;;  %357 = vmatpush1.bf16.msra.mxu1 %v1111_v21  ;;  %v1142_v57 = vld [vmem:[%s1520_s3 + $0x80] sm:$0xff]  }
  0x15   :  { %358 = vmatprep.subr.bf16.mxu1 %v1115_v22 }
  0x17   :  { %318 = vmatpush1.bf16.msra.mxu0 %v1114_v23 }
  0x18   :  { %319 = vmatprep.subr.bf16.mxu0 %v1118_v24  ;;  %359 = vmatpush1.bf16.msra.mxu1 %v1117_v25 }
  0x19   :  { %360 = vmatprep.subr.bf16.mxu1 %v1121_v27 }
  0x1b   :  { %320 = vmatpush1.bf16.msra.mxu0 %v1120_v26 }
  0x1c   :  { %321 = vmatprep.subr.bf16.mxu0 %v1124_v29  ;;  %361 = vmatpush1.bf16.msra.mxu1 %v1123_v28 }
  0x1d   :  { %362 = vmatprep.subr.bf16.mxu1 %v1127_v31 }
  0x1f   :  { %322 = vmatpush1.bf16.msra.mxu0 %v1126_v30 }
  0x20   :  { %1038 = vmatprep.subr.bf16.mxu0 %v1203_v37  ;;  %363 = vmatpush1.bf16.msra.mxu1 %v1129_v33 }
  0x21   :  { %985 = vmatprep.subr.bf16.mxu1 %v1138_v35 }
  0x22   :  { %340 = vmatmul.mubr.bf16.vlgmr.msra.gmra.mrb[0].mxu0 %v23_v34 }
  0x23   :  { %1039 = vmatpush3.bf16.msra.mxu0 %v1130_v36  ;;  %1054 = vmatprep.mubr.msk.bf16.mxu0 %vm1204_vm0, %v1203_v37 }
  0x24   :  { %381 = vmatmul.mubr.bf16.vlgmr.msra.gmra.mrb[0].mxu1 %v23_v34  ;;  %1040 = vmatprep.subr.bf16.mxu0 %v1203_v37 }
  0x25   :  { %986 = vmatpush3.bf16.msra.mxu1 %v1139_v38 }
  0x26   :  { %987 = vmatprep.subr.bf16.mxu1 %v1141_v39 }
  0x27   :  { %1041 = vmatpush3.bf16.msra.mxu0 %v1131_v40 }
  0x28   :  { %1042 = vmatprep.subr.bf16.mxu0 %v1203_v37 }
  0x29   :  { %988 = vmatpush3.bf16.msra.mxu1 %v1143_v41 }
  0x2a   :  { %989 = vmatprep.subr.bf16.mxu1 %v1145_v42 }
  0x2b   :  { %1043 = vmatpush3.bf16.msra.mxu0 %v1132_v43 }
  0x2c   :  { %1044 = vmatprep.subr.bf16.mxu0 %v1203_v37 }
  0x2d   :  { %990 = vmatpush3.bf16.msra.mxu1 %v1147_v44 }
  0x2e   :  { %991 = vmatprep.subr.bf16.mxu1 %v1149_v45 }
  0x2f   :  { %1045 = vmatpush3.bf16.msra.mxu0 %v1133_v46 }
  0x30   :  { %1046 = vmatprep.subr.bf16.mxu0 %v1203_v37 }
  0x31   :  { %992 = vmatpush3.bf16.msra.mxu1 %v1151_v47 }
  0x32   :  { %993 = vmatprep.subr.bf16.mxu1 %v1153_v48 }
  0x33   :  { %1047 = vmatpush3.bf16.msra.mxu0 %v1134_v49 }
  0x34   :  { %1048 = vmatprep.subr.bf16.mxu0 %v1203_v37 }
  0x35   :  { %994 = vmatpush3.bf16.msra.mxu1 %v1155_v50 }
  0x36   :  { %995 = vmatprep.subr.bf16.mxu1 %v1157_v51 }
  0x37   :  { %1049 = vmatpush3.bf16.msra.mxu0 %v1135_v52 }
  0x38   :  { %1050 = vmatprep.subr.bf16.mxu0 %v1203_v37 }
  0x39   :  { %996 = vmatpush3.bf16.msra.mxu1 %v1159_v53 }
  0x3b   :  { %1051 = vmatpush3.bf16.msra.mxu0 %v1136_v54 }
  0x3c   :  { %1052 = vmatprep.subr.bf16.mxu0 %v1203_v37 }
  0x3f   :  { %1053 = vmatpush3.bf16.msra.mxu0 %v1137_v55 }
  0x40   :  { %1007 = vmatprep.subr.bf16.mxu0 %v1140_v56 }
  0x41   :  { %10 = vsyncpa [#allocation3], 0  ;;  %v1146_v59 = vld [vmem:[%s1520_s3 + $0x88] sm:$0xff]   ;;  %v1148_v60 = vld [vmem:[%s1520_s3 + $0xd0] sm:$0xff]   ;;  %v282_v12 = vlaneseq  ;;  %vm880_vm1 = vcmask 778240  }
  0x42   :  { %1055 = vmatmul.mubr.bf16.vlgmr.msra.gmra.mrb[4].mxu0 %v23_v34  ;;  %v1150_v61 = vld [vmem:[%s1520_s3 + $0x90] sm:$0xff]   ;;  %v1152_v62 = vld [vmem:[%s1520_s3 + $0xd8] sm:$0xff]   ;;  %v1156_v0 = vld [vmem:[%s1520_s3 + $0xe0] sm:$0xff]  }
  0x43   :  { %1008 = vmatpush3.bf16.msra.mxu0 %v1142_v57  ;;  %v1154_v63 = vld [vmem:[%s1520_s3 + $0x98] sm:$0xff]   ;;  %v1158_v1 = vld [vmem:[%s1520_s3 + $0xa0] sm:$0xff]   ;;  %v1160_v2 = vld [vmem:[%s1520_s3 + $0xe8] sm:$0xff]   ;;  %v283_v13 = vshrl.u32 %v282_v12, 7 }
  0x44   :  { %1009 = vmatprep.subr.bf16.mxu0 %v1144_v58  ;;  %v1161_v3 = vld [vmem:[%s1520_s3 + $0x70] sm:$0xff]   ;;  %v1162_v4 = vld [vmem:[%s1520_s3 + $0xa8] sm:$0xff]   ;;  %v1165_v7 = vld [vmem:[%s1520_s3 + $0x78] sm:$0xff]  }
  0x45   :  { %v1163_v5 = vld [vmem:[%s1520_s3 + $0x30] sm:$0xff]   ;;  %997 = vmatprep.subr.bf16.mxu1 %v1161_v3  ;;  %v1167_v9 = vld [vmem:[%s1520_s3 + $0x38] sm:$0xff]   ;;  %v284_v14 = vsub.s32 0, %v283_v13  ;;  %v72_v15 = vld [vmem:[%s1519_s2] sm:$0x1f]  ;;  %v288_v16 = vsub.s32 1, %v283_v13 }
  0x46   :  { %998 = vmatpush3.bf16.msra.mxu1 %v1163_v5  ;;  %v1164_v6 = vld [vmem:[%s1520_s3 + $0xf0] sm:$0xff]   ;;  %v1168_v10 = vld [vmem:[%s1520_s3 + $0xf8] sm:$0xff]   ;;  %v292_v17 = vsub.s32 2, %v283_v13  ;;  %v296_v18 = vsub.s32 3, %v283_v13  ;;  %v1170_v41 = vld [vmem:[%s1520_s3 + $0x100] sm:$0xff]   ;;  %v300_v49 = vsub.s32 4, %v283_v13 }
  0x47   :  { %1010 = vmatpush3.bf16.msra.mxu0 %v1146_v59  ;;  %v1166_v8 = vld [vmem:[%s1520_s3 + $0xb0] sm:$0xff]   ;;  %999 = vmatprep.subr.bf16.mxu1 %v1165_v7  ;;  %v1169_v11 = vld [vmem:[%s1520_s3 + $0xb8] sm:$0xff]   ;;  %v285_v19 = vrot.slane %v72_v15, %v284_v14  ;;  %v289_v20 = vrot.slane %v72_v15, %v288_v16  ;;  %v1171_v45 = vld [vmem:[%s1520_s3 + $0x108] sm:$0xff]  }
  0x48   :  { %1011 = vmatprep.subr.bf16.mxu0 %v1148_v60  ;;  %v293_v21 = vrot.slane %v72_v15, %v292_v17  ;;  %v297_v23 = vrot.slane %v72_v15, %v296_v18  ;;  %v1172_v46 = vld [vmem:[%s1520_s3 + $0x110] sm:$0xff]   ;;  %v1173_v47 = vld [vmem:[%s1520_s3 + $0x118] sm:$0xff]   ;;  %v1174_v48 = vld [vmem:[%s1520_s3 + $0x120] sm:$0xff]   ;;  %v301_v51 = vrot.slane %v72_v15, %v300_v49 }
  0x49   :  { %v1175_v50 = vld [vmem:[%s1520_s3 + $0x128] sm:$0xff]   ;;  %v1176_v52 = vld [vmem:[%s1520_s3 + $0x130] sm:$0xff]   ;;  %v1177_v57 = vld [vmem:[%s1520_s3 + $0x138] sm:$0xff]   ;;  %s1205_s3 = smov [#allocation2]  }
  0x4a   :  { %1000 = vmatpush3.bf16.msra.mxu1 %v1167_v9  ;;  %s888_s27 = sshll.u32 %s1205_s3, 4  ;;  %s889_s27 = int_to_ptr.vmem [resolvable:$true] %s888_s27 }
  0x4b   :  { %1012 = vmatpush3.bf16.msra.mxu0 %v1150_v61  ;;  %1058 = vmatprep.subr.bf16.mxu1 %v1203_v37  ;;  %s1182_s1 = scalar_lea.vmem %s889_s27, 32  ;;  %p1183_p1 = scmp.lt.s32.totalorder %s889_s27, %s889_s27 }
  0x4c   :  { %1013 = vmatprep.subr.bf16.mxu0 %v1152_v62  ;;  %v519_v62 = vld [vmem:[%s1521_s4] sm:$0x1]  ;;  %s1178_s4 = scalar_lea.vmem %s889_s27, 16 }
  0x4d   :  { %p1179_p0 = scmp.ne.s32.totalorder %s889_s27, %s1178_s4  ;;  %p1184_p2 = scmp.lt.s32.totalorder %s1182_s1, %s1178_s4 }
  0x4f   :  { %1014 = vmatpush3.bf16.msra.mxu0 %v1154_v63  ;;  %p1185_p3 = por %p1184_p2, %p1183_p1 }
  0x50   :  { %1015 = vmatprep.subr.bf16.mxu0 %v1156_v0 }
  0x51   :  { %p1186_p4 = pnand %p1185_p3, %p1179_p0 }
  0x53   :  { %1016 = vmatpush3.bf16.msra.mxu0 %v1158_v1 }
  0x54   :  { %1017 = vmatprep.subr.bf16.mxu0 %v1160_v2 }
  0x57   :  { %1018 = vmatpush3.bf16.msra.mxu0 %v1162_v4 }
  0x58   :  { %1019 = vmatprep.subr.bf16.mxu0 %v1164_v6 }
  0x5b   :  { %1020 = vmatpush3.bf16.msra.mxu0 %v1166_v8 }
  0x5c   :  { %1021 = vmatprep.subr.bf16.mxu0 %v1168_v10 }
  0x5f   :  { %1022 = vmatpush3.bf16.msra.mxu0 %v1169_v11 }
  0xf5   :  { %v341_v22 = vpop.f32.mrb[0].mxu0 }
  0xf6   :  { %v342_v24 = vadd.f32 %v341_v22, %v285_v19  ;;  %v343_v25 = vpop.f32.mrb[1].mxu0 }
  0xf7   :  { %v344_v26 = vadd.f32 %v343_v25, %v289_v20  ;;  %v345_v27 = vpop.f32.mrb[2].mxu0  ;;  %v382_v28 = vpop.f32.mrb[0].mxu1 }
  0xf8   :  { %v429_v29 = vmax.f32 %v342_v24, 0.0  ;;  %v383_v30 = vadd.f32 %v382_v28, %v293_v21  ;;  %v346_v31 = vpop.f32.mrb[3].mxu0  ;;  %v384_v32 = vpop.f32.mrb[1].mxu1 }
  0xf9   :  { %v430_v33 = vmax.f32 %v344_v26, 0.0  ;;  %v385_v34 = vadd.f32 %v384_v32, %v297_v23  ;;  %v386_v35 = vpop.f32.mrb[2].mxu1 }
  0xfa   :  { %v431_v36 = vmax.f32 %v383_v30, 0.0  ;;  %v387_v38 = vpop.f32.mrb[3].mxu1  ;;  %v434_v42 = vpack.c.bf16 %v429_v29, %v429_v29 }
  0xfb   :  { %v435_v39 = vpack.c.bf16 %v430_v33, %v430_v33  ;;  %v432_v40 = vmax.f32 %v385_v34, 0.0 }
  0xfc   :  { %v436_v43 = vpack.c.bf16 %v431_v36, %v431_v36 }
  0xfd   :  { %v437_v44 = vpack.c.bf16 %v432_v40, %v432_v40  ;;  %792 = vmatprep.mubr.bf16.mxu1 %v435_v39 }
  0xfe   :  { %793 = vmatmul.mubr.bf16.vlgmr.msra.gmra.mrb[4].mxu1 %v434_v42 }
  0xff   :  { %1059 = vmatpush3.bf16.msra.mxu1 %v1170_v41  ;;  %832 = vmatprep.mubr.bf16.mxu0 %v437_v44 }
 0x100   :  { %833 = vmatmul.mubr.bf16.vlgmr.msra.gmra.mrb[8].mxu0 %v436_v43  ;;  %1060 = vmatprep.subr.bf16.mxu1 %v1203_v37 }
 0x101   :  { %1074 = vmatprep.mubr.msk.bf16.mxu1 %vm1204_vm0, %v1203_v37 }
 0x103   :  { %1061 = vmatpush3.bf16.msra.mxu1 %v1171_v45 }
 0x104   :  { %1062 = vmatprep.subr.bf16.mxu1 %v1203_v37 }
 0x107   :  { %1063 = vmatpush3.bf16.msra.mxu1 %v1172_v46 }
 0x108   :  { %1064 = vmatprep.subr.bf16.mxu1 %v1203_v37 }
 0x10b   :  { %1065 = vmatpush3.bf16.msra.mxu1 %v1173_v47 }
 0x10c   :  { %1066 = vmatprep.subr.bf16.mxu1 %v1203_v37 }
 0x10f   :  { %1067 = vmatpush3.bf16.msra.mxu1 %v1174_v48 }
 0x110   :  { %1068 = vmatprep.subr.bf16.mxu1 %v1203_v37 }
 0x113   :  { %1069 = vmatpush3.bf16.msra.mxu1 %v1175_v50 }
 0x114   :  { %1070 = vmatprep.subr.bf16.mxu1 %v1203_v37 }
 0x115   :  { %v423_v53 = vpop.f32.mrb[4].mxu0 }
 0x116   :  { %v424_v54 = vadd.f32 %v423_v53, %v301_v51  ;;  %v1056_v55 = vpop.f32.mrb[5].mxu0 }
 0x117   :  { %1071 = vmatpush3.bf16.msra.mxu1 %v1176_v52  ;;  %v426_v56 = vpop.f32.mrb[6].mxu0 }
 0x118   :  { %v433_v58 = vmax.f32 %v424_v54, 0.0  ;;  %v1057_v59 = vpop.f32.mrb[7].mxu0  ;;  %1072 = vmatprep.subr.bf16.mxu1 %v1203_v37 }
 0x11a   :  { %v438_v60 = vpack.c.bf16 %v433_v58, %v433_v58 }
 0x11b   :  { %1073 = vmatpush3.bf16.msra.mxu1 %v1177_v57 }
 0x11e   :  { %1075 = vmatmul.mubr.bf16.vlgmr.msra.gmra.mrb[8].mxu1 %v438_v60 }
 0x1d1   :  { %v1001_v61 = vpop.f32.mrb[4].mxu1 }
 0x1d2   :  { %v1002_v63 = vpop.f32.mrb[5].mxu1 }
 0x1d3   :  { %v1003_v0 = vadd.f32 %v1002_v63, %v1001_v61  ;;  %v1004_v1 = vpop.f32.mrb[6].mxu1  ;;  %v1023_v2 = vpop.f32.mrb[8].mxu0 }
 0x1d4   :  { %v1005_v3 = vpop.f32.mrb[7].mxu1  ;;  %v1024_v4 = vpop.f32.mrb[9].mxu0 }
 0x1d5   :  { %v795_v5 = vadd.f32 %v1003_v0, %v519_v62  ;;  %v1025_v6 = vadd.f32 %v1024_v4, %v1023_v2  ;;  %v1026_v7 = vpop.f32.mrb[10].mxu0 }
 0x1d6   :  { %v1027_v8 = vpop.f32.mrb[11].mxu0 }
 0x1d7   :  { %v835_v9 = vadd.f32 %v1025_v6, %v795_v5 }
 0x1f1   :  { %v874_v37 = vpop.f32.mrb[8].mxu1 }
 0x1f2   :  { %v875_v10 = vadd.f32 %v874_v37, %v835_v9  ;;  %v1076_v11 = vpop.f32.mrb[9].mxu1 }
 0x1f3   :  { %v877_v12 = vpop.f32.mrb[10].mxu1 }
 0x1f4   :  { %v1077_v13 = vpop.f32.mrb[11].mxu1  ;;  %881 = vst.msk [vmem:[#allocation2] sm:$0x1] %vm880_vm1, %v875_v10 }
 0x1f5   :  { %1189 = shalt.err (!%p1186_p4)
}
 0x1f6   :  { %s1190_s30 = scalar_lea.hbm %s1522_s5, 16 }
 0x1f7   :  { %p1191_p5 = scmp.ne.s32.totalorder %s1522_s5, %s1190_s30  ;;  %p1194_p6 = scmp.lt.u32.totalorder %s1190_s30, %s1522_s5 }
 0x1f9   :  { %p1196_p7 = pnand %p1194_p6, %p1191_p5 }
 0x1fb   :  { %1199 = shalt.err (!%p1196_p7)
}
 0x1fc   :  { %891 = dma.vmem_to_hbm [thread:$0]  %s889_s27, 16, %s1522_s5, [#allocation3]  }
 0x1fd   :  { %1200 = dma.done.wait [#allocation3], 16  }
 0x1fe   :  { %1201 = vsyncadd [#allocation3], 4294967280 }
 0x1ff   :  { %895 = vsyncpa [#allocation3], 1 }

</bundles_post_ra>
